<compile_context>
chip_gen: v7x
topology: tpu7x:2x2x1
jax: 0.10.0
libtpu: 0.0.40
codegen_flags: <defaults>
</compile_context>

<pallas_src>
import functools
import math

import jax
import jax.numpy as jnp
from jax import lax
from jax.experimental import pallas as pl
from jax.experimental.pallas import tpu as pltpu


def _round_up(x: int, m: int) -> int:
    return ((x + m - 1) // m) * m


def _cdiv(a: int, b: int) -> int:
    return (a + b - 1) // b


def _device_kind() -> str:
    try:
        return jax.devices()[0].device_kind.lower()
    except Exception:
        return ""


def _default_num_tc() -> int:
    # v7x has 2 TensorCores per chip; v5e/v6e have 1.
    # TODO(synk): on v7x verify in xprof that the "parallel" grid axis actually
    # shards across both TCs; if not, switch to pltpu.CORE_PARALLEL / core_map.
    return 2 if "v7" in _device_kind() else 1


def _default_bf16_elementwise() -> bool:
    # bf16 VALU exists on v6e/v7x; v5e (and older) must do elementwise in f32.
    k = _device_kind()
    return any(s in k for s in ("v6", "v7"))


# --------------------------------------------------------------------------- #
# Kernel
# --------------------------------------------------------------------------- #
def mlp_kernel(x_ref, *refs, bf16_elementwise):
    """Whole-MLP forward for one batch tile (batch rows packed 4-per-lane-row).

    refs = (w0, b0, w1, b1, ..., w_{L-1}, b_{L-1}, w_last_T, b_last, out_ref)
    All packed weights are block-diagonal (pack copies), biases are lane-tiled.
    Every hidden linear is followed by ReLU; the final layer by Sigmoid,
    matching the nn.Sequential in the PyTorch module.
    """
    *hidden_refs, wlt_ref, blast_ref, o_ref = refs
    n_relu = len(hidden_refs) // 2

    ew_dtype = jnp.bfloat16 if bf16_elementwise else jnp.float32

    h = x_ref[...]                                    # (rows, pack*Din)
    for i in range(n_relu):
        w_ref = hidden_refs[2 * i]
        b_ref = hidden_refs[2 * i + 1]                # (1, pack*width), f32 in HBM
        # MXU matmul in the weights' dtype (bf16 fast path), f32 accumulation.
        z = jnp.dot(h, w_ref[...], preferred_element_type=jnp.float32)
        # Bias add + ReLU: bf16 VALU path on v6e/v7x, f32 on v5e.
        z = z.astype(ew_dtype) + b_ref[...].astype(ew_dtype)
        h = jnp.maximum(z, 0).astype(w_ref.dtype)     # no-op cast on bf16 path

    # Final (hidden -> 1) layer computed transposed (NT contraction) so the
    # result lands lane-dense: z[p, r] = sum_k wlt[p, k] * h[r, k].
    z = lax.dot_general(wlt_ref[...], h, (((1,), (1,)), ((), ())),
                        preferred_element_type=jnp.float32)   # (pack, rows)
    z = z + blast_ref[...]                            # scalar bias (1,1), f32
    o_ref[0] = jax.nn.sigmoid(z).astype(o_ref.dtype)  # lane-dense store


# --------------------------------------------------------------------------- #
# Parameter preparation (done ONCE, outside the hot path)
# --------------------------------------------------------------------------- #
def pack_mlp_params(flat_params, pack, use_bf16=True):
    """Build block-diagonal packed weights (pack batch rows per lane-row).

    flat_params = [w0, b0, w1, b1, ...] with w already (in, out), b (1, out).
    Weights are cast to bf16 here (once) on the fast path; biases stay f32.
    The last weight is pre-transposed for the lane-dense NT matmul.
    """
    wdtype = jnp.bfloat16 if use_bf16 else jnp.float32
    n_lin = len(flat_params) // 2
    packed = []
    for i in range(n_lin):
        w = flat_params[2 * i]
        b = flat_params[2 * i + 1]
        wp = jax.scipy.linalg.block_diag(*([w] * pack))
        if i < n_lin - 1:
            bp = jnp.tile(b, (1, pack))
            packed += [wp.astype(wdtype), bp.astype(jnp.float32)]
        else:
            # last layer: (pack*width, pack) -> transpose to (pack, pack*width)
            packed += [wp.T.astype(wdtype), b.reshape(1, 1).astype(jnp.float32)]
    return packed


# --------------------------------------------------------------------------- #
# Forward wrapper
# --------------------------------------------------------------------------- #
@functools.partial(
    jax.jit,
    static_argnames=("pack", "use_bf16", "bf16_elementwise", "num_tc"))
def mlp_forward(x, *packed_params, pack, use_bf16=True,
                bf16_elementwise=False, num_tc=1):
    B, Din = x.shape
    out_dtype = x.dtype
    compute_dtype = jnp.bfloat16 if use_bf16 else jnp.float32

    # Grid / tile: one serial step on single-TC chips (per-step overhead
    # dominates at these sizes); two tiles on v7x when the batch is big enough.
    row_align = pack * 8                      # packed rows must be sublane-aligned
    grid_n = 2 if (num_tc >= 2 and B >= 256) else 1
    tile = _round_up(_cdiv(B, grid_n), row_align)
    B_pad = tile * grid_n
    rows = tile // pack                       # packed rows per grid step
    din_p = pack * Din

    x_c = x.astype(compute_dtype)             # no-op if caller already hands bf16
    if B_pad != B:
        x_c = jnp.pad(x_c, ((0, B_pad - B), (0, 0)))
    x_p = x_c.reshape(B_pad // pack, din_p)   # pack 4 batch rows per lane-row

    # Full weight/bias blocks resident in VMEM each step (constant index_map
    # so they are not re-copied across grid steps).
    param_specs = [pl.BlockSpec(p.shape, lambda i: (0, 0)) for p in packed_params]
    in_specs = [pl.BlockSpec((rows, din_p), lambda i: (i, 0))] + param_specs
    out_specs = pl.BlockSpec((1, pack, rows), lambda i: (i, 0, 0))

    kernel = functools.partial(
        mlp_kernel, bf16_elementwise=bool(use_bf16 and bf16_elementwise))

    out = pl.pallas_call(
        kernel,
        out_shape=jax.ShapeDtypeStruct((grid_n, pack, rows), out_dtype),
        grid_spec=pltpu.PrefetchScalarGridSpec(
            num_scalar_prefetch=0,
            grid=(grid_n,),
            in_specs=in_specs,
            out_specs=out_specs,
        ),
        compiler_params=pltpu.CompilerParams(
            dimension_semantics=("parallel",),
        ),
    )(x_p, *packed_params)

    # out[i, p, r] holds batch element i*tile + pack*r + p; un-permute.
    y = out.transpose(0, 2, 1).reshape(B_pad, 1)
    return y[:B]


# --------------------------------------------------------------------------- #
# Init + pure-JAX reference
# --------------------------------------------------------------------------- #
def init_mlp_params(key, max_num, hidden_width, num_hidden, dtype=jnp.float32):
    """nn.Linear-style init (uniform +-1/sqrt(fan_in)); w as (in, out), b (1, out)."""
    dims = [2 * max_num] + [hidden_width] * num_hidden + [1]
    params = []
    for i in range(len(dims) - 1):
        fan_in, fan_out = dims[i], dims[i + 1]
        bound = 1.0 / math.sqrt(fan_in)
        key, kw, kb = jax.random.split(key, 3)
        w = jax.random.uniform(kw, (fan_in, fan_out), dtype, -bound, bound)
        b = jax.random.uniform(kb, (1, fan_out), dtype, -bound, bound)
        params += [w, b]
    return params


def mlp_reference(x, flat_params):
    """Pure-JAX f32 reference for correctness check."""
    n_lin = len(flat_params) // 2
    h = x
    for i in range(n_lin):
        w, b = flat_params[2 * i], flat_params[2 * i + 1]
        h = h @ w + b
        if i < n_lin - 1:
            h = jnp.maximum(h, 0.0)
    return jax.nn.sigmoid(h)


if __name__ == "__main__":
    # Shapes consistent with the module: max_num=8 -> input dim 16,
    # hidden_width=32, num_hidden=3.
    max_num, hidden_width, num_hidden = 8, 32, 3

    pack = max(1, 128 // hidden_width)        # 4 batch rows per 128-lane row
    num_tc = _default_num_tc()
    bf16_ew = _default_bf16_elementwise()

    key = jax.random.PRNGKey(0)
    key, kx = jax.random.split(key)

    params = init_mlp_params(key, max_num, hidden_width, num_hidden)

    batch = 256
    x = jax.random.normal(kx, (batch, 2 * max_num), jnp.float32)
    ref = mlp_reference(x, params)

    # f32 path: tight check against the reference.
    packed_f32 = pack_mlp_params(params, pack, use_bf16=False)
    out_f32 = jax.block_until_ready(
        mlp_forward(x, *packed_f32, pack=pack, use_bf16=False,
                    bf16_elementwise=False, num_tc=num_tc))
    assert out_f32.shape == (batch, 1)
    assert jnp.allclose(out_f32, ref, atol=2e-5, rtol=1e-5), "f32 mismatch vs reference"

    # bf16 fast path: bf16 weights/activations, f32 accumulation; looser tol.
    packed_bf16 = pack_mlp_params(params, pack, use_bf16=True)
    out_bf16 = jax.block_until_ready(
        mlp_forward(x, *packed_bf16, pack=pack, use_bf16=True,
                    bf16_elementwise=bf16_ew, num_tc=num_tc))
    assert out_bf16.shape == (batch, 1)
    assert jnp.allclose(out_bf16, ref, atol=3e-2, rtol=0.0), "bf16 mismatch vs reference"

    # Ragged batch: exercises padding + the output un-permute.
    batch2 = 37
    key, kx2 = jax.random.split(key)
    x2 = jax.random.normal(kx2, (batch2, 2 * max_num), jnp.float32)
    ref2 = mlp_reference(x2, params)
    out2 = jax.block_until_ready(
        mlp_forward(x2, *packed_f32, pack=pack, use_bf16=False,
                    bf16_elementwise=False, num_tc=num_tc))
    assert out2.shape == (batch2, 1)
    assert jnp.allclose(out2, ref2, atol=2e-5, rtol=1e-5), "ragged f32 mismatch vs reference"

    print("KERNEL_OK")
</pallas_src>

<mosaic_0001>
module attributes {stable_mosaic.version = 11 : i64} {
  func.func @mlp_kernel(%arg0: i32, %arg1: memref<64x64xf32, #tpu.memory_space<vmem>>, %arg2: memref<64x128xf32, #tpu.memory_space<vmem>>, %arg3: memref<1x128xf32, #tpu.memory_space<vmem>>, %arg4: memref<128x128xf32, #tpu.memory_space<vmem>>, %arg5: memref<1x128xf32, #tpu.memory_space<vmem>>, %arg6: memref<128x128xf32, #tpu.memory_space<vmem>>, %arg7: memref<1x128xf32, #tpu.memory_space<vmem>>, %arg8: memref<4x128xf32, #tpu.memory_space<vmem>>, %arg9: memref<1x1xf32, #tpu.memory_space<vmem>>, %arg10: memref<1x4x64xf32, #tpu.memory_space<vmem>>) attributes {dimension_semantics = [#tpu.dimension_semantics<parallel>], iteration_bounds = array<i64: 1>, scalar_prefetch = 0 : i64, scratch_operands = 0 : i64, tpu.core_type = #tpu.core_type<tc>, window_params = [{transform_indices = @transform_0, window_bounds = array<i64: 64, 64>}, {pipeline_mode = #tpu.pipeline_mode<synchronous>, transform_indices = @transform_1, window_bounds = array<i64: 64, 128>}, {pipeline_mode = #tpu.pipeline_mode<synchronous>, transform_indices = @transform_2, window_bounds = array<i64: 1, 128>}, {pipeline_mode = #tpu.pipeline_mode<synchronous>, transform_indices = @transform_3, window_bounds = array<i64: 128, 128>}, {pipeline_mode = #tpu.pipeline_mode<synchronous>, transform_indices = @transform_4, window_bounds = array<i64: 1, 128>}, {pipeline_mode = #tpu.pipeline_mode<synchronous>, transform_indices = @transform_5, window_bounds = array<i64: 128, 128>}, {pipeline_mode = #tpu.pipeline_mode<synchronous>, transform_indices = @transform_6, window_bounds = array<i64: 1, 128>}, {pipeline_mode = #tpu.pipeline_mode<synchronous>, transform_indices = @transform_7, window_bounds = array<i64: 4, 128>}, {pipeline_mode = #tpu.pipeline_mode<synchronous>, transform_indices = @transform_8, window_bounds = array<i64: 1, 1>}, {transform_indices = @transform_9, window_bounds = array<i64: 1, 4, 64>}]} {
    %c0 = arith.constant 0 : index
    %c0_0 = arith.constant 0 : index
    %0 = vector.load %arg1[%c0, %c0_0] : memref<64x64xf32, #tpu.memory_space<vmem>>, vector<64x64xf32>
    %c0_1 = arith.constant 0 : index
    %c0_2 = arith.constant 0 : index
    %1 = vector.load %arg2[%c0_1, %c0_2] : memref<64x128xf32, #tpu.memory_space<vmem>>, vector<64x128xf32>
    %cst = arith.constant dense<0.000000e+00> : vector<64x128xf32>
    %2 = tpu.matmul %0, %1, %cst {dimension_numbers = #tpu.dot_dimension_numbers<[1], [0], [0], [1], [0, 0, 1, 1], [], []>} : vector<64x64xf32>, vector<64x128xf32>, vector<64x128xf32> -> vector<64x128xf32>
    %c0_3 = arith.constant 0 : index
    %c0_4 = arith.constant 0 : index
    %3 = vector.load %arg3[%c0_3, %c0_4] : memref<1x128xf32, #tpu.memory_space<vmem>>, vector<1x128xf32>
    %4 = vector.broadcast %3 : vector<1x128xf32> to vector<64x128xf32>
    %5 = arith.addf %2, %4 : vector<64x128xf32>
    %cst_5 = arith.constant 0.000000e+00 : f32
    %6 = vector.broadcast %cst_5 : f32 to vector<64x128xf32>
    %7 = arith.maximumf %5, %6 : vector<64x128xf32>
    %c0_6 = arith.constant 0 : index
    %c0_7 = arith.constant 0 : index
    %8 = vector.load %arg4[%c0_6, %c0_7] : memref<128x128xf32, #tpu.memory_space<vmem>>, vector<128x128xf32>
    %cst_8 = arith.constant dense<0.000000e+00> : vector<64x128xf32>
    %9 = tpu.matmul %7, %8, %cst_8 {dimension_numbers = #tpu.dot_dimension_numbers<[1], [0], [0], [1], [0, 0, 1, 1], [], []>} : vector<64x128xf32>, vector<128x128xf32>, vector<64x128xf32> -> vector<64x128xf32>
    %c0_9 = arith.constant 0 : index
    %c0_10 = arith.constant 0 : index
    %10 = vector.load %arg5[%c0_9, %c0_10] : memref<1x128xf32, #tpu.memory_space<vmem>>, vector<1x128xf32>
    %11 = vector.broadcast %10 : vector<1x128xf32> to vector<64x128xf32>
    %12 = arith.addf %9, %11 : vector<64x128xf32>
    %cst_11 = arith.constant 0.000000e+00 : f32
    %13 = vector.broadcast %cst_11 : f32 to vector<64x128xf32>
    %14 = arith.maximumf %12, %13 : vector<64x128xf32>
    %c0_12 = arith.constant 0 : index
    %c0_13 = arith.constant 0 : index
    %15 = vector.load %arg6[%c0_12, %c0_13] : memref<128x128xf32, #tpu.memory_space<vmem>>, vector<128x128xf32>
    %cst_14 = arith.constant dense<0.000000e+00> : vector<64x128xf32>
    %16 = tpu.matmul %14, %15, %cst_14 {dimension_numbers = #tpu.dot_dimension_numbers<[1], [0], [0], [1], [0, 0, 1, 1], [], []>} : vector<64x128xf32>, vector<128x128xf32>, vector<64x128xf32> -> vector<64x128xf32>
    %c0_15 = arith.constant 0 : index
    %c0_16 = arith.constant 0 : index
    %17 = vector.load %arg7[%c0_15, %c0_16] : memref<1x128xf32, #tpu.memory_space<vmem>>, vector<1x128xf32>
    %18 = vector.broadcast %17 : vector<1x128xf32> to vector<64x128xf32>
    %19 = arith.addf %16, %18 : vector<64x128xf32>
    %cst_17 = arith.constant 0.000000e+00 : f32
    %20 = vector.broadcast %cst_17 : f32 to vector<64x128xf32>
    %21 = arith.maximumf %19, %20 : vector<64x128xf32>
    %c0_18 = arith.constant 0 : index
    %c0_19 = arith.constant 0 : index
    %22 = vector.load %arg8[%c0_18, %c0_19] : memref<4x128xf32, #tpu.memory_space<vmem>>, vector<4x128xf32>
    %cst_20 = arith.constant dense<0.000000e+00> : vector<4x64xf32>
    %23 = tpu.matmul %22, %21, %cst_20 {dimension_numbers = #tpu.dot_dimension_numbers<[1], [1], [0], [0], [0, 0, 1, 0], [], []>} : vector<4x128xf32>, vector<64x128xf32>, vector<4x64xf32> -> vector<4x64xf32>
    %c0_21 = arith.constant 0 : index
    %c0_22 = arith.constant 0 : index
    %24 = vector.load %arg9[%c0_21, %c0_22] : memref<1x1xf32, #tpu.memory_space<vmem>>, vector<1x1xf32>
    %25 = vector.broadcast %24 : vector<1x1xf32> to vector<4x64xf32>
    %26 = arith.addf %23, %25 : vector<4x64xf32>
    %27 = arith.negf %26 : vector<4x64xf32>
    %28 = math.exp %27 : vector<4x64xf32>
    %cst_23 = arith.constant 1.000000e+00 : f32
    %29 = vector.broadcast %cst_23 : f32 to vector<4x64xf32>
    %30 = arith.addf %29, %28 : vector<4x64xf32>
    %31 = arith.divf %29, %30 : vector<4x64xf32>
    %c0_24 = arith.constant 0 : index
    %c0_25 = arith.constant 0 : index
    %c0_26 = arith.constant 0 : index
    %32 = vector.load %arg10[%c0_24, %c0_25, %c0_26] : memref<1x4x64xf32, #tpu.memory_space<vmem>>, vector<1x4x64xf32>
    %33 = vector.shape_cast %32 : vector<1x4x64xf32> to vector<4x64xf32>
    %34 = vector.shape_cast %31 : vector<4x64xf32> to vector<1x4x64xf32>
    tpu.vector_store %arg10[%c0_24, %c0_25, %c0_26], %34 {strides = array<i32>} : memref<1x4x64xf32, #tpu.memory_space<vmem>>, vector<1x4x64xf32>,
    return
  }
  func.func @transform_0(%arg0: i32) -> (i32, i32) {
    %c0_i32 = arith.constant 0 : i32
    %c0_i32_0 = arith.constant 0 : i32
    return %arg0, %c0_i32 : i32, i32
  }
  func.func @transform_1(%arg0: i32) -> (i32, i32) {
    %c0_i32 = arith.constant 0 : i32
    %c0_i32_0 = arith.constant 0 : i32
    %c0_i32_1 = arith.constant 0 : i32
    return %c0_i32, %c0_i32_0 : i32, i32
  }
  func.func @transform_2(%arg0: i32) -> (i32, i32) {
    %c0_i32 = arith.constant 0 : i32
    %c0_i32_0 = arith.constant 0 : i32
    %c0_i32_1 = arith.constant 0 : i32
    return %c0_i32, %c0_i32_0 : i32, i32
  }
  func.func @transform_3(%arg0: i32) -> (i32, i32) {
    %c0_i32 = arith.constant 0 : i32
    %c0_i32_0 = arith.constant 0 : i32
    %c0_i32_1 = arith.constant 0 : i32
    return %c0_i32, %c0_i32_0 : i32, i32
  }
  func.func @transform_4(%arg0: i32) -> (i32, i32) {
    %c0_i32 = arith.constant 0 : i32
    %c0_i32_0 = arith.constant 0 : i32
    %c0_i32_1 = arith.constant 0 : i32
    return %c0_i32, %c0_i32_0 : i32, i32
  }
  func.func @transform_5(%arg0: i32) -> (i32, i32) {
    %c0_i32 = arith.constant 0 : i32
    %c0_i32_0 = arith.constant 0 : i32
    %c0_i32_1 = arith.constant 0 : i32
    return %c0_i32, %c0_i32_0 : i32, i32
  }
  func.func @transform_6(%arg0: i32) -> (i32, i32) {
    %c0_i32 = arith.constant 0 : i32
    %c0_i32_0 = arith.constant 0 : i32
    %c0_i32_1 = arith.constant 0 : i32
    return %c0_i32, %c0_i32_0 : i32, i32
  }
  func.func @transform_7(%arg0: i32) -> (i32, i32) {
    %c0_i32 = arith.constant 0 : i32
    %c0_i32_0 = arith.constant 0 : i32
    %c0_i32_1 = arith.constant 0 : i32
    return %c0_i32, %c0_i32_0 : i32, i32
  }
  func.func @transform_8(%arg0: i32) -> (i32, i32) {
    %c0_i32 = arith.constant 0 : i32
    %c0_i32_0 = arith.constant 0 : i32
    %c0_i32_1 = arith.constant 0 : i32
    return %c0_i32, %c0_i32_0 : i32, i32
  }
  func.func @transform_9(%arg0: i32) -> (i32, i32, i32) {
    %c0_i32 = arith.constant 0 : i32
    %c0_i32_0 = arith.constant 0 : i32
    %c0_i32_1 = arith.constant 0 : i32
    return %arg0, %c0_i32, %c0_i32_0 : i32, i32, i32
  }
}

</mosaic_0001>

<bundles_post_ra>
// kernel: mlp_forward.1
= control target key start
LH: loop header
LB: loop body
LE: loop exit
PB: predicated region body
PF: predicated region fallthrough
CT: control target
= control target key end

     0   :  { %vm57_vm0 = vcmask 523264   ;;  %vm883_vm1 = vmmov 0   ;;  %vm554_vm2 = vcmask 519168   ;;  %s1106_s1 = inlined_call_operand.vmem [shape: f32[64,128], index: 1, kind: input, shape index: {}]   ;;  %s1107_s0 = inlined_call_operand.vmem [shape: f32[64,64], index: 0, kind: input, shape index: {}]   ;;  %s1108_s3 = inlined_call_operand.vmem [shape: f32[128,128], index: 3, kind: input, shape index: {}]   ;;  %s1109_s5 = inlined_call_operand.vmem [shape: f32[128,128], index: 5, kind: input, shape index: {}]   ;;  %s1110_s2 = inlined_call_operand.vmem [shape: f32[1,128], index: 2, kind: input, shape index: {}]   ;;  %s1111_s4 = inlined_call_operand.vmem [shape: f32[1,128], index: 4, kind: input, shape index: {}]   ;;  %s1112_s8 = inlined_call_operand.<no memory space> [shape: f32[1,1], index: 8, kind: input, shape index: {}]   ;;  %s1113_s6 = inlined_call_operand.vmem [shape: f32[1,128], index: 6, kind: input, shape index: {}]   ;;  %s1114_s7 = inlined_call_operand.vmem [shape: f32[4,128], index: 7, kind: input, shape index: {}]   ;;  %s1115_s9 = inlined_call_operand.vmem [shape: f32[1,4,64], index: 9, kind: output, shape index: {}]  }
   0x1   :  { %v42_v0 = vld [vmem:[%s1106_s1] sm:$0xff]  ;;  %v43_v1 = vld [vmem:[%s1106_s1 + $0x8] sm:$0xff]  ;;  %v44_v2 = vld [vmem:[%s1106_s1 + $0x10] sm:$0xff] }
   0x2   :  { %v781_v3 = vpack.c.bf16 %v43_v1, %v42_v0  ;;  %v45_v4 = vld [vmem:[%s1106_s1 + $0x18] sm:$0xff]  ;;  %v46_v6 = vld [vmem:[%s1106_s1 + $0x20] sm:$0xff]  ;;  %v47_v7 = vld [vmem:[%s1106_s1 + $0x28] sm:$0xff] }
   0x3   :  { %v785_v5 = vpack.c.bf16 %v45_v4, %v44_v2  ;;  %v34_v8 = vld [vmem:[%s1107_s0] sm:$0xff]  ;;  %v789_v9 = vpack.c.bf16 %v47_v7, %v46_v6  ;;  %v48_v10 = vld [vmem:[%s1106_s1 + $0x30] sm:$0xff]  ;;  %v196_v12 = vld [vmem:[%s1108_s3 + $0x8] sm:$0xff] }
   0x4   :  { %782 = vmatprep.subr.bf16.mxu0 %v781_v3  ;;  %662 = vmatprep.mubr.msk.f32.mxu0 %vm57_vm0, %v34_v8  ;;  %v195_v11 = vld [vmem:[%s1108_s3] sm:$0xff]  ;;  %v49_v13 = vld [vmem:[%s1106_s1 + $0x38] sm:$0xff]  ;;  %v197_v15 = vld [vmem:[%s1108_s3 + $0x10] sm:$0xff] }
   0x5   :  { %784 = vmatpush3.bf16.msra.mxu0 %v781_v3  ;;  %v797_v14 = vpack.c.bf16 %v196_v12, %v195_v11  ;;  %v198_v16 = vld [vmem:[%s1108_s3 + $0x18] sm:$0xff]  ;;  %v199_v18 = vld [vmem:[%s1108_s3 + $0x20] sm:$0xff]  ;;  %v200_v19 = vld [vmem:[%s1108_s3 + $0x28] sm:$0xff]  ;;  %v793_v20 = vpack.c.bf16 %v49_v13, %v48_v10 }
   0x6   :  { %786 = vmatprep.subr.bf16.mxu0 %v785_v5  ;;  %v801_v17 = vpack.c.bf16 %v198_v16, %v197_v15  ;;  %v805_v21 = vpack.c.bf16 %v200_v19, %v199_v18  ;;  %v201_v22 = vld [vmem:[%s1108_s3 + $0x30] sm:$0xff]  ;;  %v202_v23 = vld [vmem:[%s1108_s3 + $0x38] sm:$0xff]  ;;  %v203_v25 = vld [vmem:[%s1108_s3 + $0x40] sm:$0xff] }
   0x7   :  { %798 = vmatprep.subr.bf16.mxu1 %v797_v14  ;;  %v809_v24 = vpack.c.bf16 %v202_v23, %v201_v22  ;;  %v204_v26 = vld [vmem:[%s1108_s3 + $0x48] sm:$0xff]  ;;  %v36_v28 = vld [vmem:[%s1107_s0 + $0x10] sm:$0xff]  ;;  %v206_v31 = vld [vmem:[%s1108_s3 + $0x58] sm:$0xff] }
   0x8   :  { %800 = vmatpush3.bf16.msra.mxu1 %v797_v14  ;;  %v35_v27 = vld [vmem:[%s1107_s0 + $0x8] sm:$0xff]  ;;  %v813_v29 = vpack.c.bf16 %v204_v26, %v203_v25  ;;  %v205_v30 = vld [vmem:[%s1108_s3 + $0x50] sm:$0xff]  ;;  %v37_v32 = vld [vmem:[%s1107_s0 + $0x18] sm:$0xff] }
   0x9   :  { %788 = vmatpush3.bf16.msra.mxu0 %v785_v5  ;;  %802 = vmatprep.subr.bf16.mxu1 %v801_v17  ;;  %v38_v33 = vld [vmem:[%s1107_s0 + $0x20] sm:$0xff]  ;;  %v817_v34 = vpack.c.bf16 %v206_v31, %v205_v30  ;;  %v208_v36 = vld [vmem:[%s1108_s3 + $0x68] sm:$0xff]  ;;  %v40_v38 = vld [vmem:[%s1107_s0 + $0x30] sm:$0xff] }
   0xa   :  { %790 = vmatprep.subr.bf16.mxu0 %v789_v9  ;;  %v207_v35 = vld [vmem:[%s1108_s3 + $0x60] sm:$0xff]  ;;  %v39_v37 = vld [vmem:[%s1107_s0 + $0x28] sm:$0xff]  ;;  %v41_v40 = vld [vmem:[%s1107_s0 + $0x38] sm:$0xff] }
   0xb   :  { %v821_v39 = vpack.c.bf16 %v208_v36, %v207_v35  ;;  %v209_v41 = vld [vmem:[%s1108_s3 + $0x70] sm:$0xff]  ;;  %v210_v42 = vld [vmem:[%s1108_s3 + $0x78] sm:$0xff]  ;;  %v331_v44 = vld [vmem:[%s1109_s5] sm:$0xff] }
   0xc   :  { %804 = vmatpush3.bf16.msra.mxu1 %v801_v17  ;;  %v825_v43 = vpack.c.bf16 %v210_v42, %v209_v41  ;;  %v332_v45 = vld [vmem:[%s1109_s5 + $0x8] sm:$0xff]  ;;  %v333_v46 = vld [vmem:[%s1109_s5 + $0x10] sm:$0xff]  ;;  %v334_v48 = vld [vmem:[%s1109_s5 + $0x18] sm:$0xff] }
   0xd   :  { %792 = vmatpush3.bf16.msra.mxu0 %v789_v9  ;;  %806 = vmatprep.subr.bf16.mxu1 %v805_v21  ;;  %v829_v47 = vpack.c.bf16 %v332_v45, %v331_v44  ;;  %v833_v49 = vpack.c.bf16 %v334_v48, %v333_v46  ;;  %v335_v50 = vld [vmem:[%s1109_s5 + $0x20] sm:$0xff]  ;;  %v336_v51 = vld [vmem:[%s1109_s5 + $0x28] sm:$0xff]  ;;  %v337_v53 = vld [vmem:[%s1109_s5 + $0x30] sm:$0xff] }
   0xe   :  { %794 = vmatprep.subr.bf16.mxu0 %v793_v20  ;;  %v837_v52 = vpack.c.bf16 %v336_v51, %v335_v50  ;;  %v338_v54 = vld [vmem:[%s1109_s5 + $0x38] sm:$0xff]  ;;  %v339_v56 = vld [vmem:[%s1109_s5 + $0x40] sm:$0xff]  ;;  %v340_v57 = vld [vmem:[%s1109_s5 + $0x48] sm:$0xff] }
   0xf   :  { %v841_v55 = vpack.c.bf16 %v338_v54, %v337_v53  ;;  %v845_v58 = vpack.c.bf16 %v340_v57, %v339_v56  ;;  %v341_v59 = vld [vmem:[%s1109_s5 + $0x50] sm:$0xff]  ;;  %v342_v60 = vld [vmem:[%s1109_s5 + $0x58] sm:$0xff]  ;;  %v343_v62 = vld [vmem:[%s1109_s5 + $0x60] sm:$0xff]  ;;  %v882_v54 = vmov 0.0|0.0   ;;  %v885_v56 = vmov 0  }
  0x10   :  { %808 = vmatpush3.bf16.msra.mxu1 %v805_v21  ;;  %v849_v61 = vpack.c.bf16 %v342_v60, %v341_v59  ;;  %v344_v63 = vld [vmem:[%s1109_s5 + $0x68] sm:$0xff]  ;;  %v560_v1 = vld [vmem:[%s1110_s2] ss:$0 sm:$0xff]  ;;  %v345_v26 = vld [vmem:[%s1109_s5 + $0x70] sm:$0xff]  ;;  %877 = vset.pattern.permute.xlu0 %v885_v56  ;;  %v14_v57 = vstv %s1112_s8 }
  0x11   :  { %796 = vmatpush3.bf16.msra.mxu0 %v793_v20  ;;  %810 = vmatprep.subr.bf16.mxu1 %v809_v24  ;;  %v853_v0 = vpack.c.bf16 %v344_v63, %v343_v62  ;;  %15 = vst [vmem:[#allocation2] sm:$0x1] %v14_v57  ;;  %v570_v59 = vld [vmem:[%s1113_s6] ss:$0 sm:$0xff] }
  0x12   :  { %830 = vmatprep.subr.bf16.mxu0 %v829_v47 }
  0x14   :  { %663 = vmatmul.mubr.msk.f32.vlgmr.msra.gmra.mrb[0].mxu0 %vm57_vm0, %v35_v27  ;;  %812 = vmatpush3.bf16.msra.mxu1 %v809_v24  ;;  %v346_v27 = vld [vmem:[%s1109_s5 + $0x78] sm:$0xff] }
  0x15   :  { %665 = vmatprep.mubr.msk.f32.mxu0 %vm57_vm0, %v36_v28  ;;  %814 = vmatprep.subr.bf16.mxu1 %v813_v29  ;;  %v857_v28 = vpack.c.bf16 %v346_v27, %v345_v26 }
  0x16   :  { %832 = vmatpush3.bf16.msra.mxu0 %v829_v47 }
  0x17   :  { %834 = vmatprep.subr.bf16.mxu0 %v833_v49 }
  0x18   :  { %666 = vmatmul.mubr.msk.f32.gmra.mrb[2].mxu0 %vm57_vm0, %v37_v32  ;;  %816 = vmatpush3.bf16.msra.mxu1 %v813_v29  ;;  %v569_v29 = vld [vmem:[%s1111_s4] ss:$0 sm:$0xff] }
  0x19   :  { %668 = vmatprep.mubr.msk.f32.mxu0 %vm57_vm0, %v38_v33  ;;  %818 = vmatprep.subr.bf16.mxu1 %v817_v34 }
  0x1a   :  { %836 = vmatpush3.bf16.msra.mxu0 %v833_v49 }
  0x1b   :  { %838 = vmatprep.subr.bf16.mxu0 %v837_v52 }
  0x1c   :  { %669 = vmatmul.mubr.msk.f32.gmra.mrb[4].mxu0 %vm57_vm0, %v39_v37  ;;  %820 = vmatpush3.bf16.msra.mxu1 %v817_v34 }
  0x1d   :  { %671 = vmatprep.mubr.msk.f32.mxu0 %vm57_vm0, %v40_v38  ;;  %822 = vmatprep.subr.bf16.mxu1 %v821_v39 }
  0x1e   :  { %840 = vmatpush3.bf16.msra.mxu0 %v837_v52 }
  0x1f   :  { %842 = vmatprep.subr.bf16.mxu0 %v841_v55 }
  0x20   :  { %672 = vmatmul.mubr.msk.f32.gmra.mrb[6].mxu0 %vm57_vm0, %v41_v40  ;;  %824 = vmatpush3.bf16.msra.mxu1 %v821_v39 }
  0x21   :  { %826 = vmatprep.subr.bf16.mxu1 %v825_v43 }
  0x22   :  { %844 = vmatpush3.bf16.msra.mxu0 %v841_v55  ;;  %v884_v55 = vmov 0.0  }
  0x23   :  { %846 = vmatprep.subr.bf16.mxu0 %v845_v58 }
  0x24   :  { %828 = vmatpush3.bf16.msra.mxu1 %v825_v43 }
  0x25   :  { %861 = vmatprep.subr.bf16.mxu1 %v882_v54 }
  0x26   :  { %848 = vmatpush3.bf16.msra.mxu0 %v845_v58  ;;  %v571_v58 = vld [vmem:[#allocation2] ss:$0 sm:$0xff] }
  0x27   :  { %850 = vmatprep.subr.bf16.mxu0 %v849_v61  ;;  %475 = vperm.xlu0 %877, %v571_v58  }
  0x2a   :  { %852 = vmatpush3.bf16.msra.mxu0 %v849_v61 }
  0x2b   :  { %854 = vmatprep.subr.bf16.mxu0 %v853_v0 }
  0x2e   :  { %856 = vmatpush3.bf16.msra.mxu0 %v853_v0 }
  0x2f   :  { %858 = vmatprep.subr.bf16.mxu0 %v857_v28 }
  0x32   :  { %860 = vmatpush3.bf16.msra.mxu0 %v857_v28 }
  0xe7   :  { %v664_v2 = vpop.f32.mrb[0].mxu0 }
  0xe8   :  { %v154_v3 = vadd.f32 %v664_v2, %v560_v1  ;;  %v148_v4 = vpop.f32.mrb[1].mxu0 }
  0xe9   :  { %v149_v5 = vadd.f32 %v560_v1, %v148_v4 }
  0xea   :  { %v188_v8 = vmax.f32 %v154_v3, 0.0 }
  0xeb   :  { %v667_v6 = vpop.f32.mrb[2].mxu0  ;;  %v187_v7 = vmax.f32 %v149_v5, 0.0 }
  0xec   :  { %v164_v9 = vadd.f32 %v667_v6, %v560_v1  ;;  %v158_v10 = vpop.f32.mrb[3].mxu0 }
  0xed   :  { %v159_v11 = vadd.f32 %v560_v1, %v158_v10  ;;  %706 = vmatprep.mubr.f32.mxu1 %v187_v7 }
  0xee   :  { %v190_v12 = vmax.f32 %v164_v9, 0.0  ;;  %707 = vmatmul.mubr.f32.vlgmr.msra.gmra.mrb[0].mxu1 %v188_v8 }
  0xef   :  { %v189_v13 = vmax.f32 %v159_v11, 0.0  ;;  %v670_v14 = vpop.f32.mrb[4].mxu0 }
  0xf0   :  { %v174_v15 = vadd.f32 %v670_v14, %v560_v1  ;;  %v168_v16 = vpop.f32.mrb[5].mxu0 }
  0xf1   :  { %709 = vmatprep.mubr.f32.mxu1 %v189_v13  ;;  %v169_v17 = vadd.f32 %v560_v1, %v168_v16 }
  0xf2   :  { %v192_v18 = vmax.f32 %v174_v15, 0.0  ;;  %710 = vmatmul.mubr.f32.gmra.mrb[2].mxu1 %v190_v12 }
  0xf3   :  { %v191_v19 = vmax.f32 %v169_v17, 0.0  ;;  %v673_v20 = vpop.f32.mrb[6].mxu0 }
  0xf4   :  { %v184_v21 = vadd.f32 %v673_v20, %v560_v1  ;;  %v178_v22 = vpop.f32.mrb[7].mxu0 }
  0xf5   :  { %712 = vmatprep.mubr.f32.mxu1 %v191_v19  ;;  %v179_v23 = vadd.f32 %v560_v1, %v178_v22 }
  0xf6   :  { %713 = vmatmul.mubr.f32.gmra.mrb[4].mxu1 %v192_v18  ;;  %v194_v24 = vmax.f32 %v184_v21, 0.0 }
  0xf7   :  { %v193_v25 = vmax.f32 %v179_v23, 0.0 }
  0xf9   :  { %715 = vmatprep.mubr.f32.mxu1 %v193_v25  ;;  %v476_v25 = vpop.permute.xlu0 %475 }
  0xfa   :  { %716 = vmatmul.mubr.f32.gmra.mrb[6].mxu1 %v194_v24  ;;  %v467_v24 = vld [vmem:[%s1114_s7] sm:$0xf] }
  0xfb   :  { %778 = vmatprep.mubr.msk.f32.mxu1 %vm883_vm1, %v884_v55 }
 0x1c1   :  { %v708_v30 = vpop.f32.mrb[0].mxu1 }
 0x1c2   :  { %v290_v31 = vadd.f32 %v708_v30, %v569_v29  ;;  %v284_v32 = vpop.f32.mrb[1].mxu1 }
 0x1c3   :  { %v285_v33 = vadd.f32 %v569_v29, %v284_v32 }
 0x1c4   :  { %v324_v36 = vmax.f32 %v290_v31, 0.0 }
 0x1c5   :  { %v323_v34 = vmax.f32 %v285_v33, 0.0  ;;  %v711_v35 = vpop.f32.mrb[2].mxu1 }
 0x1c6   :  { %v300_v37 = vadd.f32 %v711_v35, %v569_v29  ;;  %v294_v38 = vpop.f32.mrb[3].mxu1 }
 0x1c7   :  { %v295_v39 = vadd.f32 %v569_v29, %v294_v38  ;;  %750 = vmatprep.mubr.f32.mxu0 %v323_v34 }
 0x1c8   :  { %v326_v40 = vmax.f32 %v300_v37, 0.0  ;;  %751 = vmatmul.mubr.f32.vlgmr.msra.gmra.mrb[8].mxu0 %v324_v36 }
 0x1c9   :  { %v325_v41 = vmax.f32 %v295_v39, 0.0  ;;  %v714_v42 = vpop.f32.mrb[4].mxu1 }
 0x1ca   :  { %v310_v43 = vadd.f32 %v714_v42, %v569_v29  ;;  %v304_v44 = vpop.f32.mrb[5].mxu1 }
 0x1cb   :  { %753 = vmatprep.mubr.f32.mxu0 %v325_v41  ;;  %v305_v45 = vadd.f32 %v569_v29, %v304_v44 }
 0x1cc   :  { %v328_v46 = vmax.f32 %v310_v43, 0.0  ;;  %754 = vmatmul.mubr.f32.gmra.mrb[10].mxu0 %v326_v40 }
 0x1cd   :  { %v327_v47 = vmax.f32 %v305_v45, 0.0  ;;  %v717_v48 = vpop.f32.mrb[6].mxu1 }
 0x1ce   :  { %v320_v49 = vadd.f32 %v717_v48, %v569_v29  ;;  %v314_v50 = vpop.f32.mrb[7].mxu1 }
 0x1cf   :  { %756 = vmatprep.mubr.f32.mxu0 %v327_v47  ;;  %v315_v51 = vadd.f32 %v569_v29, %v314_v50 }
 0x1d0   :  { %757 = vmatmul.mubr.f32.gmra.mrb[12].mxu0 %v328_v46  ;;  %v330_v52 = vmax.f32 %v320_v49, 0.0 }
 0x1d1   :  { %v329_v53 = vmax.f32 %v315_v51, 0.0 }
 0x1d3   :  { %759 = vmatprep.mubr.f32.mxu0 %v329_v53 }
 0x1d4   :  { %760 = vmatmul.mubr.f32.gmra.mrb[14].mxu0 %v330_v52 }
 0x29b   :  { %v752_v60 = vpop.f32.mrb[8].mxu0 }
 0x29c   :  { %v426_v61 = vadd.f32 %v752_v60, %v570_v59  ;;  %v420_v62 = vpop.f32.mrb[9].mxu0 }
 0x29d   :  { %v421_v63 = vadd.f32 %v570_v59, %v420_v62 }
 0x29e   :  { %v460_v0 = vmax.f32 %v426_v61, 0.0 }
 0x29f   :  { %v459_v1 = vmax.f32 %v421_v63, 0.0  ;;  %v755_v2 = vpop.f32.mrb[10].mxu0 }
 0x2a0   :  { %v436_v3 = vadd.f32 %v755_v2, %v570_v59  ;;  %v430_v4 = vpop.f32.mrb[11].mxu0 }
 0x2a1   :  { %v862_v5 = vpack.c.bf16 %v460_v0, %v459_v1  ;;  %v431_v6 = vadd.f32 %v570_v59, %v430_v4 }
 0x2a2   :  { %v462_v7 = vmax.f32 %v436_v3, 0.0 }
 0x2a3   :  { %v461_v8 = vmax.f32 %v431_v6, 0.0  ;;  %863 = vmatpush3.bf16.xpose.msra.mxu1 %v862_v5  ;;  %v758_v9 = vpop.f32.mrb[12].mxu0 }
 0x2a4   :  { %v446_v10 = vadd.f32 %v758_v9, %v570_v59  ;;  %v440_v11 = vpop.f32.mrb[13].mxu0  ;;  %864 = vmatprep.subr.bf16.mxu1 %v882_v54 }
 0x2a5   :  { %v865_v12 = vpack.c.bf16 %v462_v7, %v461_v8  ;;  %v441_v13 = vadd.f32 %v570_v59, %v440_v11 }
 0x2a6   :  { %v464_v14 = vmax.f32 %v446_v10, 0.0 }
 0x2a7   :  { %v463_v15 = vmax.f32 %v441_v13, 0.0  ;;  %v761_v16 = vpop.f32.mrb[14].mxu0 }
 0x2a8   :  { %v456_v17 = vadd.f32 %v761_v16, %v570_v59  ;;  %v450_v18 = vpop.f32.mrb[15].mxu0 }
 0x2a9   :  { %v868_v19 = vpack.c.bf16 %v464_v14, %v463_v15  ;;  %v451_v20 = vadd.f32 %v570_v59, %v450_v18 }
 0x2aa   :  { %v466_v21 = vmax.f32 %v456_v17, 0.0 }
 0x2ab   :  { %866 = vmatpush3.bf16.xpose.msra.mxu1 %v865_v12  ;;  %v465_v22 = vmax.f32 %v451_v20, 0.0 }
 0x2ac   :  { %867 = vmatprep.subr.bf16.mxu1 %v882_v54 }
 0x2ad   :  { %v871_v23 = vpack.c.bf16 %v466_v21, %v465_v22 }
 0x2b3   :  { %869 = vmatpush3.bf16.xpose.msra.mxu1 %v868_v19 }
 0x2b4   :  { %870 = vmatprep.subr.bf16.mxu1 %v882_v54 }
 0x2bb   :  { %872 = vmatpush3.bf16.xpose.msra.mxu1 %v871_v23 }
 0x2c2   :  { %779 = vmatmul.mubr.f32.vlgmr.msra.gmra.mrb[8].mxu1 %v467_v24 }
 0x395   :  { %v544_v26 = vpop.f32.mrb[8].mxu1 }
 0x396   :  { %v545_v27 = vadd.f32 %v544_v26, %v476_v25  ;;  %v780_v28 = vpop.f32.mrb[9].mxu1 }
 0x398   :  { %v572_v29 = vmul.f32 -1.442695, %v545_v27 }
 0x39a   :  { %878 = vpow2.f32 %v572_v29 }
 0x3a4   :  { %v879_v30 = vpop.eup %878 }
 0x3a5   :  { %v551_v31 = vadd.f32 1.0, %v879_v30 }
 0x3a7   :  { %880 = vrcp.f32 %v551_v31 }
 0x3b1   :  { %v881_v32 = vpop.eup %880 }
 0x3b2   :  { %555 = vst.msk [vmem:[%s1115_s9] sm:$0xf] %vm554_vm2, %v881_v32 }

</bundles_post_ra>
